<compile_context>
chip_gen: v7x
topology: tpu7x:2x2x1
jax: 0.10.0
libtpu: 0.0.40
codegen_flags: <defaults>
</compile_context>

<pallas_src>
import jax
import jax.numpy as jnp
from jax.experimental import pallas as pl
from jax.experimental.pallas import tpu as pltpu


def _round_up(x, m):
    return (x + m - 1) // m * m


def _choose_tiles(B, T, C_pad, itemsize):
    """Pick (Bt, Tt): sublane-aligned, sized for a conservative VMEM budget."""
    budget = 12 * 1024 * 1024  # fits v5e's 16 MiB default scoped VMEM, v7x-safe

    Bt = min(_round_up(B, 8), 64)
    Tt = min(_round_up(T, 8), 512)

    def cost(bt, tt):
        # double-buffered input tile + two f32 accumulators
        return 2 * bt * tt * C_pad * itemsize + 2 * bt * C_pad * 4

    while cost(Bt, Tt) > budget and Tt > 8:
        Tt = max(8, _round_up(Tt // 2, 8))
    while cost(Bt, Tt) > budget and Bt > 8:
        Bt = max(8, _round_up(Bt // 2, 8))
    return Bt, Tt


def _linear_softpool_kernel(td_ref, out_ref, num_ref, den_ref):
    # td_ref: (Bt, Tt, C_pad) input tile.  num/den: (Bt, C_pad) f32 scratch.
    t = pl.program_id(1)

    @pl.when(t == 0)
    def _():
        num_ref[...] = jnp.zeros_like(num_ref)
        den_ref[...] = jnp.zeros_like(den_ref)

    td = td_ref[...].astype(jnp.float32)
    num_ref[...] += jnp.sum(td * td, axis=1)   # (Bt, C_pad)
    den_ref[...] += jnp.sum(td, axis=1)        # (Bt, C_pad)

    @pl.when(t == pl.num_programs(1) - 1)
    def _():
        # epsilon applied exactly once, at the final divide
        out_ref[...] = (num_ref[...] / (den_ref[...] + 1e-07)).astype(out_ref.dtype)


def linear_soft_pool(logits, time_decision, pooldim=1, block_b=None, block_t=None):
    """Pallas implementation of LinearSoftPool.forward.

    `logits` is unused (matches the PyTorch module). Only pooldim=1 over a
    (B, T, C) tensor is supported by this kernel. `block_b` / `block_t`
    optionally override the automatic tile choice (must be multiples of 8).
    """
    del logits  # unused, as in the reference module
    assert pooldim == 1, "kernel implements pooling over dim 1 of (B, T, C)"
    B, T, C = time_decision.shape
    dtype = time_decision.dtype
    itemsize = jnp.dtype(dtype).itemsize

    # Lane-dense class axis.
    C_pad = _round_up(C, 128)

    Bt, Tt = _choose_tiles(B, T, C_pad, itemsize)
    if block_b is not None:
        Bt = _round_up(block_b, 8)
    if block_t is not None:
        Tt = _round_up(block_t, 8)

    B_pad = _round_up(B, Bt)
    T_pad = _round_up(T, Tt)

    td = time_decision
    if (B_pad, T_pad, C_pad) != (B, T, C):
        # Zero padding contributes 0 to both sums; padded rows yield
        # 0 / (0 + 1e-7) = 0 (no NaNs) and are sliced off below.
        td = jnp.pad(
            td, ((0, B_pad - B), (0, T_pad - T), (0, C_pad - C))
        )

    grid = (B_pad // Bt, T_pad // Tt)

    out = pl.pallas_call(
        _linear_softpool_kernel,
        out_shape=jax.ShapeDtypeStruct((B_pad, C_pad), dtype),
        grid=grid,
        in_specs=[
            pl.BlockSpec((Bt, Tt, C_pad), lambda b, t: (b, t, 0)),
        ],
        out_specs=pl.BlockSpec((Bt, C_pad), lambda b, t: (b, 0)),
        scratch_shapes=[
            pltpu.VMEM((Bt, C_pad), jnp.float32),  # num accumulator
            pltpu.VMEM((Bt, C_pad), jnp.float32),  # den accumulator
        ],
        compiler_params=pltpu.CompilerParams(
            dimension_semantics=("parallel", "arbitrary"),
        ),
    )(td)

    return out[:B, :C]


def linear_soft_pool_ref(logits, time_decision, pooldim=1):
    # Pure-JAX reference, identical math to the PyTorch module.
    del logits
    td = time_decision
    return (td ** 2).sum(axis=pooldim) / (td.sum(axis=pooldim) + 1e-07)


if __name__ == "__main__":
    key = jax.random.PRNGKey(0)
    k1, k2, k3, k4 = jax.random.split(key, 4)

    # Small shapes consistent with the module: batch=2, time=8, classes=32.
    B, T, C = 2, 8, 32
    logits = jax.random.normal(k1, (B, T, C), dtype=jnp.float32)
    time_decision = jax.nn.sigmoid(jax.random.normal(k2, (B, T, C), dtype=jnp.float32))

    out = linear_soft_pool(logits, time_decision)
    out = jax.block_until_ready(out)
    ref = linear_soft_pool_ref(logits, time_decision)
    assert out.shape == (B, C)
    assert jnp.allclose(out, ref, atol=1e-5, rtol=1e-5), "mismatch vs reference"

    # Second check: force T-tiling (block_t=8 on T=24) to exercise the
    # accumulator init/finalize path across multiple reduction steps.
    B2, T2, C2 = 2, 24, 32
    logits2 = jax.random.normal(k3, (B2, T2, C2), dtype=jnp.float32)
    td2 = jax.nn.sigmoid(jax.random.normal(k4, (B2, T2, C2), dtype=jnp.float32))
    out2 = jax.block_until_ready(linear_soft_pool(logits2, td2, block_t=8))
    ref2 = linear_soft_pool_ref(logits2, td2)
    assert out2.shape == (B2, C2)
    assert jnp.allclose(out2, ref2, atol=1e-5, rtol=1e-5), "mismatch vs reference (tiled T)"

    print("KERNEL_OK")
</pallas_src>

<mosaic_0001>
module attributes {stable_mosaic.version = 11 : i64} {
  func.func @_linear_softpool_kernel(%arg0: i32, %arg1: i32, %arg2: memref<8x8x128xf32, #tpu.memory_space<vmem>>, %arg3: memref<8x128xf32, #tpu.memory_space<vmem>>, %arg4: memref<8x128xf32, #tpu.memory_space<vmem>>, %arg5: memref<8x128xf32, #tpu.memory_space<vmem>>) attributes {dimension_semantics = [#tpu.dimension_semantics<parallel>, #tpu.dimension_semantics<arbitrary>], iteration_bounds = array<i64: 1, 1>, scalar_prefetch = 0 : i64, scratch_operands = 2 : i64, tpu.core_type = #tpu.core_type<tc>, window_params = [{transform_indices = @transform_0, window_bounds = array<i64: 8, 8, 128>}, {transform_indices = @transform_1, window_bounds = array<i64: 8, 128>}]} {
    %c0_i32 = arith.constant 0 : i32
    %0 = arith.cmpi eq, %arg1, %c0_i32 : i32
    %1 = arith.extui %0 : i1 to i32
    %c0_i32_0 = arith.constant 0 : i32
    %2 = arith.cmpi ne, %1, %c0_i32_0 : i32
    scf.if %2 {
      %cst_14 = arith.constant 0.000000e+00 : f32
      %16 = vector.broadcast %cst_14 : f32 to vector<8x128xf32>
      %c0_15 = arith.constant 0 : index
      %c0_16 = arith.constant 0 : index
      %17 = vector.load %arg4[%c0_15, %c0_16] : memref<8x128xf32, #tpu.memory_space<vmem>>, vector<8x128xf32>
      tpu.vector_store %arg4[%c0_15, %c0_16], %16 {strides = array<i32>} : memref<8x128xf32, #tpu.memory_space<vmem>>, vector<8x128xf32>,
      %cst_17 = arith.constant 0.000000e+00 : f32
      %18 = vector.broadcast %cst_17 : f32 to vector<8x128xf32>
      %c0_18 = arith.constant 0 : index
      %c0_19 = arith.constant 0 : index
      %19 = vector.load %arg5[%c0_18, %c0_19] : memref<8x128xf32, #tpu.memory_space<vmem>>, vector<8x128xf32>
      tpu.vector_store %arg5[%c0_18, %c0_19], %18 {strides = array<i32>} : memref<8x128xf32, #tpu.memory_space<vmem>>, vector<8x128xf32>,
    } else {
    }
    %c0 = arith.constant 0 : index
    %c0_1 = arith.constant 0 : index
    %c0_2 = arith.constant 0 : index
    %3 = vector.load %arg2[%c0, %c0_1, %c0_2] : memref<8x8x128xf32, #tpu.memory_space<vmem>>, vector<8x8x128xf32>
    %c0_3 = arith.constant 0 : index
    %c0_4 = arith.constant 0 : index
    %4 = vector.load %arg4[%c0_3, %c0_4] : memref<8x128xf32, #tpu.memory_space<vmem>>, vector<8x128xf32>
    %5 = arith.mulf %3, %3 : vector<8x8x128xf32>
    %cst = arith.constant dense<0.000000e+00> : vector<8x128xf32>
    %6 = vector.multi_reduction <add>, %5, %cst [1] : vector<8x8x128xf32> to vector<8x128xf32>
    %7 = arith.addf %4, %6 : vector<8x128xf32>
    %c0_5 = arith.constant 0 : index
    %c0_6 = arith.constant 0 : index
    %8 = vector.load %arg4[%c0_5, %c0_6] : memref<8x128xf32, #tpu.memory_space<vmem>>, vector<8x128xf32>
    tpu.vector_store %arg4[%c0_5, %c0_6], %7 {strides = array<i32>} : memref<8x128xf32, #tpu.memory_space<vmem>>, vector<8x128xf32>,
    %c0_7 = arith.constant 0 : index
    %c0_8 = arith.constant 0 : index
    %9 = vector.load %arg5[%c0_7, %c0_8] : memref<8x128xf32, #tpu.memory_space<vmem>>, vector<8x128xf32>
    %cst_9 = arith.constant dense<0.000000e+00> : vector<8x128xf32>
    %10 = vector.multi_reduction <add>, %3, %cst_9 [1] : vector<8x8x128xf32> to vector<8x128xf32>
    %11 = arith.addf %9, %10 : vector<8x128xf32>
    %c0_10 = arith.constant 0 : index
    %c0_11 = arith.constant 0 : index
    %12 = vector.load %arg5[%c0_10, %c0_11] : memref<8x128xf32, #tpu.memory_space<vmem>>, vector<8x128xf32>
    tpu.vector_store %arg5[%c0_10, %c0_11], %11 {strides = array<i32>} : memref<8x128xf32, #tpu.memory_space<vmem>>, vector<8x128xf32>,
    %c0_i32_12 = arith.constant 0 : i32
    %13 = arith.cmpi eq, %arg1, %c0_i32_12 : i32
    %14 = arith.extui %13 : i1 to i32
    %c0_i32_13 = arith.constant 0 : i32
    %15 = arith.cmpi ne, %14, %c0_i32_13 : i32
    scf.if %15 {
      %c0_14 = arith.constant 0 : index
      %c0_15 = arith.constant 0 : index
      %16 = vector.load %arg4[%c0_14, %c0_15] : memref<8x128xf32, #tpu.memory_space<vmem>>, vector<8x128xf32>
      %c0_16 = arith.constant 0 : index
      %c0_17 = arith.constant 0 : index
      %17 = vector.load %arg5[%c0_16, %c0_17] : memref<8x128xf32, #tpu.memory_space<vmem>>, vector<8x128xf32>
      %cst_18 = arith.constant 1.000000e-07 : f32
      %18 = vector.broadcast %cst_18 : f32 to vector<8x128xf32>
      %19 = arith.addf %17, %18 : vector<8x128xf32>
      %20 = arith.divf %16, %19 : vector<8x128xf32>
      %c0_19 = arith.constant 0 : index
      %c0_20 = arith.constant 0 : index
      %21 = vector.load %arg3[%c0_19, %c0_20] : memref<8x128xf32, #tpu.memory_space<vmem>>, vector<8x128xf32>
      tpu.vector_store %arg3[%c0_19, %c0_20], %20 {strides = array<i32>} : memref<8x128xf32, #tpu.memory_space<vmem>>, vector<8x128xf32>,
    } else {
    }
    return
  }
  func.func @transform_0(%arg0: i32, %arg1: i32) -> (i32, i32, i32) {
    %c0_i32 = arith.constant 0 : i32
    %c0_i32_0 = arith.constant 0 : i32
    return %arg0, %arg1, %c0_i32 : i32, i32, i32
  }
  func.func @transform_1(%arg0: i32, %arg1: i32) -> (i32, i32) {
    %c0_i32 = arith.constant 0 : i32
    %c0_i32_0 = arith.constant 0 : i32
    return %arg0, %c0_i32 : i32, i32
  }
}

</mosaic_0001>

<bundles_post_ra>
// kernel: tpu_custom_call.1
= control target key start
LH: loop header
LB: loop body
LE: loop exit
PB: predicated region body
PF: predicated region fallthrough
CT: control target
= control target key end

     0   :  { %6 = vsyncpa [#allocation5], 0  ;;  %s346_s0 = inlined_call_operand.hbm [shape: f32[8,8,128], index: 0, kind: input, shape index: {}]   ;;  %s347_s1 = inlined_call_operand.hbm [shape: f32[8,128], index: 1, kind: output, shape index: {}]  }
   0x1   :  { %7 = vsyncpa [#allocation6], 0  ;;  %s264_s6 = smov [#allocation4]   ;;  %s216_s10 = scalar_lea.hbm %s346_s0, 1024 }
   0x2   :  { %s13_s7 = sshll.u32 %s264_s6, 4  ;;  %p217_p0 = scmp.ne.s32.totalorder %s346_s0, %s216_s10  ;;  %s14_s7 = int_to_ptr.vmem [resolvable:$true] %s13_s7 }
   0x3   :  { %p220_p1 = scmp.lt.u32.totalorder %s216_s10, %s346_s0 }
   0x5   :  { %p222_p2 = pnand %p220_p1, %p217_p0 }
   0x7   :  { %225 = shalt.err (!%p222_p2)
}
   0x8   :  { %s226_s15 = scalar_lea.vmem %s14_s7, 1024  ;;  %p231_p4 = scmp.lt.s32.totalorder %s14_s7, %s14_s7 }
   0x9   :  { %p227_p3 = scmp.ne.s32.totalorder %s14_s7, %s226_s15  ;;  %p232_p5 = scmp.lt.s32.totalorder %s226_s15, %s226_s15 }
   0xb   :  { %p233_p6 = por %p232_p5, %p231_p4 }
   0xd   :  { %p234_p7 = pnand %p233_p6, %p227_p3 }
   0xf   :  { %237 = shalt.err (!%p234_p7)
}
  0x10   :  { %s265_s16 = smov 128   ;;  %s266_s17 = smov 8  }
  0x11   :  { %19 = dma.hbm_to_vmem [thread:$0]  %s346_s0, 1024, %s14_s7, [#allocation5], %s265_s16, %s265_s16, %s266_s17  }
  0x12   :  { %260 = dma.done.wait [#allocation5], 1024  }
  0x13   :  { %261 = vsyncadd [#allocation5], 4294966272  ;;  %v29_v0 = vld [vmem:[#allocation4] sm:$0xff]  ;;  %v30_v1 = vld [vmem:[#allocation4 + $0x8] sm:$0xff]  ;;  %vm102_vm0 = vcmask 1041409   ;;  %vm104_vm1 = vcmask 1042434  }
  0x14   :  { %v31_v2 = vld [vmem:[#allocation4 + $0x10] sm:$0xff]  ;;  %v32_v3 = vld [vmem:[#allocation4 + $0x18] sm:$0xff]  ;;  %v33_v4 = vld [vmem:[#allocation4 + $0x20] sm:$0xff]  ;;  %v38_v6 = vmul.f32 %v29_v0, %v29_v0  ;;  %v39_v7 = vmul.f32 %v30_v1, %v30_v1  ;;  %v120_v35 = vrot.slane %v29_v0, 4  ;;  %v126_v37 = vrot.slane %v30_v1, 4  ;;  %s267_s0 = smov [#allocation7]  }
  0x15   :  { %v34_v5 = vld [vmem:[#allocation4 + $0x28] sm:$0xff]  ;;  %v40_v8 = vmul.f32 %v31_v2, %v31_v2  ;;  %v290_v9 = vld [vmem:[#allocation4 + $0x30] sm:$0xff]  ;;  %v41_v10 = vmul.f32 %v32_v3, %v32_v3  ;;  %v42_v11 = vmul.f32 %v33_v4, %v33_v4  ;;  %v294_v18 = vld [vmem:[#allocation4 + $0x38] sm:$0xff]  ;;  %v132_v48 = vrot.slane %v31_v2, 4  ;;  %s201_s20 = sshll.u32 %s267_s0, 4  ;;  %s202_s20 = int_to_ptr.vmem [resolvable:$true] %s201_s20 }
  0x16   :  { %v43_v12 = vmul.f32 %v34_v5, %v34_v5  ;;  %v44_v13 = vmul.f32 %v290_v9, %v290_v9  ;;  %v46_v14 = vrot.slane %v38_v6, 4  ;;  %v52_v15 = vrot.slane %v39_v7, 4  ;;  %s238_s21 = scalar_lea.vmem %s202_s20, 128  ;;  %p243_p9 = scmp.lt.s32.totalorder %s202_s20, %s202_s20 }
  0x17   :  { %v58_v16 = vrot.slane %v40_v8, 4  ;;  %v64_v17 = vrot.slane %v41_v10, 4  ;;  %v45_v21 = vmul.f32 %v294_v18, %v294_v18  ;;  %v70_v22 = vrot.slane %v42_v11, 4  ;;  %p239_p8 = scmp.ne.s32.totalorder %s202_s20, %s238_s21  ;;  %p244_p10 = scmp.lt.s32.totalorder %s238_s21, %s238_s21 }
  0x18   :  { %v47_v19 = vadd.f32 %v46_v14, %v38_v6  ;;  %v53_v20 = vadd.f32 %v52_v15, %v39_v7  ;;  %v76_v23 = vrot.slane %v43_v12, 4  ;;  %v82_v26 = vrot.slane %v44_v13, 4 }
  0x19   :  { %v59_v24 = vadd.f32 %v58_v16, %v40_v8  ;;  %v65_v25 = vadd.f32 %v64_v17, %v41_v10  ;;  %v71_v29 = vadd.f32 %v70_v22, %v42_v11  ;;  %v88_v31 = vrot.slane %v45_v21, 4  ;;  %p245_p11 = por %p244_p10, %p243_p9 }
  0x1a   :  { %v48_v27 = vrot.slane %v47_v19, 2  ;;  %v54_v28 = vrot.slane %v53_v20, 2  ;;  %v298_v30 = vadd.f32 %v76_v23, %v43_v12  ;;  %v300_v34 = vadd.f32 %v82_v26, %v44_v13 }
  0x1b   :  { %v60_v32 = vrot.slane %v59_v24, 2  ;;  %v66_v33 = vrot.slane %v65_v25, 2  ;;  %v72_v39 = vrot.slane %v71_v29, 2  ;;  %v303_v41 = vadd.f32 %v88_v31, %v45_v21  ;;  %p246_p12 = pnand %p245_p11, %p239_p8 }
  0x1c   :  { %v49_v36 = vadd.f32 %v48_v27, %v47_v19  ;;  %v55_v38 = vadd.f32 %v54_v28, %v53_v20  ;;  %v78_v40 = vrot.slane %v298_v30, 2  ;;  %v84_v44 = vrot.slane %v300_v34, 2 }
  0x1d   :  { %v61_v42 = vadd.f32 %v60_v32, %v59_v24  ;;  %v305_v43 = vadd.f32 %v66_v33, %v65_v25  ;;  %v121_v45 = vadd.f32 %v120_v35, %v29_v0  ;;  %v127_v47 = vadd.f32 %v126_v37, %v30_v1 }
  0x1e   :  { %v50_v46 = vrot.slane %v49_v36, 1  ;;  %v138_v49 = vrot.slane %v32_v3, 4  ;;  %v56_v50 = vrot.slane %v55_v38, 1  ;;  %v144_v52 = vrot.slane %v33_v4, 4 }
  0x1f   :  { %v122_v51 = vrot.slane %v121_v45, 2  ;;  %v150_v53 = vrot.slane %v34_v5, 4  ;;  %v73_v54 = vadd.f32 %v72_v39, %v71_v29  ;;  %vm106_vm2 = vcmask 1043459  }
  0x20   :  { %v128_v55 = vrot.slane %v127_v47, 2  ;;  %v133_v56 = vadd.f32 %v132_v48, %v31_v2  ;;  %v139_v57 = vadd.f32 %v138_v49, %v32_v3  ;;  %v62_v58 = vrot.slane %v61_v42, 1 }
  0x21   :  { %vm108_vm3 = vcmask 1044484   ;;  %v123_v59 = vadd.f32 %v122_v51, %v121_v45  ;;  %v145_v60 = vadd.f32 %v144_v52, %v33_v4  ;;  %v151_v61 = vadd.f32 %v150_v53, %v34_v5 }
  0x22   :  { %v51_v62 = vadd.f32 %v50_v46, %v49_v36  ;;  %vm110_vm4 = vcmask 1045509   ;;  %v129_v63 = vadd.f32 %v128_v55, %v127_v47  ;;  %v134_v0 = vrot.slane %v133_v56, 2 }
  0x23   :  { %v140_v1 = vrot.slane %v139_v57, 2  ;;  %v57_v6 = vadd.f32 %v56_v50, %v55_v38  ;;  %v124_v7 = vrot.slane %v123_v59, 1  ;;  %v146_v8 = vrot.slane %v145_v60, 2 }
  0x24   :  { %v152_v10 = vrot.slane %v151_v61, 2  ;;  %v130_v11 = vrot.slane %v129_v63, 1  ;;  %v135_v12 = vadd.f32 %v134_v0, %v133_v56  ;;  %v156_v2 = vrot.slane %v290_v9, 4 }
  0x25   :  { %v141_v13 = vadd.f32 %v140_v1, %v139_v57  ;;  %v125_v3 = vadd.f32 %v124_v7, %v123_v59  ;;  %v147_v14 = vadd.f32 %v146_v8, %v145_v60  ;;  %v162_v4 = vrot.slane %v294_v18, 4 }
  0x26   :  { %v153_v15 = vadd.f32 %v152_v10, %v151_v61  ;;  %v131_v5 = vadd.f32 %v130_v11, %v129_v63  ;;  %v136_v16 = vrot.slane %v135_v12, 1  ;;  %v157_v19 = vadd.f32 %v156_v2, %v290_v9 }
  0x27   :  { %v142_v17 = vrot.slane %v141_v13, 1  ;;  %v68_v20 = vrot.slane %v305_v43, 1  ;;  %v148_v21 = vrot.slane %v147_v14, 1  ;;  %v163_v23 = vadd.f32 %v162_v4, %v294_v18 }
  0x28   :  { %v154_v22 = vrot.slane %v153_v15, 1  ;;  %v137_v24 = vadd.f32 %v136_v16, %v135_v12  ;;  %v158_v26 = vrot.slane %v157_v19, 2  ;;  %v176_v27 = vsel %vm102_vm0, %v131_v5, %v125_v3 }
  0x29   :  { %v143_v25 = vadd.f32 %v142_v17, %v141_v13  ;;  %v63_v28 = vadd.f32 %v62_v58, %v61_v42  ;;  %v149_v29 = vadd.f32 %v148_v21, %v147_v14  ;;  %v164_v32 = vrot.slane %v163_v23, 2 }
  0x2a   :  { %v155_v31 = vadd.f32 %v154_v22, %v153_v15  ;;  %v79_v33 = vadd.f32 %v78_v40, %v298_v30  ;;  %v103_v35 = vsel %vm102_vm0, %v57_v6, %v51_v62  ;;  %v159_v9 = vadd.f32 %v158_v26, %v157_v19 }
  0x2b   :  { %v177_v36 = vsel %vm104_vm1, %v137_v24, %v176_v27  ;;  %v74_v37 = vrot.slane %v73_v54, 1  ;;  %vm112_vm5 = vcmask 1046534   ;;  %v165_v38 = vadd.f32 %v164_v32, %v163_v23 }
  0x2c   :  { %v178_v18 = vsel %vm106_vm2, %v143_v25, %v177_v36  ;;  %v69_v39 = vadd.f32 %v68_v20, %v305_v43  ;;  %v90_v45 = vrot.slane %v303_v41, 2  ;;  %v160_v42 = vrot.slane %v159_v9, 1 }
  0x2d   :  { %v179_v46 = vsel %vm108_vm3, %v149_v29, %v178_v18  ;;  %v85_v30 = vadd.f32 %v84_v44, %v300_v34  ;;  %v105_v40 = vsel %vm104_vm1, %v63_v28, %v103_v35  ;;  %v166_v47 = vrot.slane %v165_v38, 1 }
  0x2e   :  { %v180_v48 = vsel %vm110_vm4, %v155_v31, %v179_v46  ;;  %v80_v49 = vrot.slane %v79_v33, 1  ;;  %vm114_vm6 = vcmask 1047559   ;;  %v161_v50 = vadd.f32 %v160_v42, %v159_v9 }
  0x2f   :  { %v75_v51 = vadd.f32 %v74_v37, %v73_v54  ;;  %v167_v52 = vadd.f32 %v166_v47, %v165_v38  ;;  %v91_v43 = vadd.f32 %v90_v45, %v303_v41  ;;  %v107_v53 = vsel %vm106_vm2, %v69_v39, %v105_v40 }
  0x30   :  { %v181_v55 = vsel %vm112_vm5, %v161_v50, %v180_v48  ;;  %v86_v56 = vrot.slane %v85_v30, 1  ;;  %v81_v34 = vadd.f32 %v80_v49, %v79_v33 }
  0x31   :  { %v182_v57 = vsel %vm114_vm6, %v167_v52, %v181_v55  ;;  %v109_v58 = vsel %vm108_vm3, %v75_v51, %v107_v53  ;;  %v92_v59 = vrot.slane %v91_v43, 1 }
  0x32   :  { %v191_v44 = vadd.f32 1e-07, %v182_v57  ;;  %v87_v60 = vadd.f32 %v86_v56, %v85_v30  ;;  %v111_v61 = vsel %vm110_vm4, %v81_v34, %v109_v58 }
  0x33   :  { %v93_v54 = vadd.f32 %v92_v59, %v91_v43 }
  0x34   :  { %214 = vrcp.f32 %v191_v44  ;;  %v113_v62 = vsel %vm112_vm5, %v87_v60, %v111_v61 }
  0x35   :  { %v115_v41 = vsel %vm114_vm6, %v93_v54, %v113_v62 }
  0x3e   :  { %v215_v63 = vpop.eup %214 }
  0x3f   :  { %v193_v0 = vmul.f32 %v215_v63, %v115_v41 }
  0x41   :  { %194 = vst [vmem:[#allocation7] sm:$0xff] %v193_v0 }
  0x42   :  { %249 = shalt.err (!%p246_p12)
}
  0x43   :  { %s250_s24 = scalar_lea.hbm %s347_s1, 128 }
  0x44   :  { %p251_p13 = scmp.ne.s32.totalorder %s347_s1, %s250_s24  ;;  %p254_p0 = scmp.lt.u32.totalorder %s250_s24, %s347_s1 }
  0x46   :  { %p256_p1 = pnand %p254_p0, %p251_p13 }
  0x48   :  { %259 = shalt.err (!%p256_p1)
}
  0x49   :  { %204 = dma.vmem_to_hbm [thread:$0]  %s202_s20, 128, %s347_s1, [#allocation6]  }
  0x4a   :  { %262 = dma.done.wait [#allocation6], 128  }
  0x4b   :  { %263 = vsyncadd [#allocation6], 4294967168 }
  0x4c   :  { %208 = vsyncpa [#allocation5], 1 }
  0x4d   :  { %209 = vsyncpa [#allocation6], 1 }

</bundles_post_ra>
